<compile_context>
chip_gen: v6e
topology: v6e:2x2x1
jax: 0.10.0
libtpu: 0.0.40
codegen_flags: <defaults>
</compile_context>

<pallas_src>
import jax
import jax.numpy as jnp
from jax.experimental import pallas as pl
from jax.experimental.pallas import tpu as pltpu

FEAT_CNT = 3
BOARD_X = 9
BOARD_Y = 9
IN_DIM = FEAT_CNT * BOARD_X * BOARD_Y   # 243
IN_PAD = 256                            # padded K of fc1 (multiple of 128)
H1 = 120
H1_PAD = 128
H2 = 256                                # already MXU aligned
ACTION_SIZE = 82                        # synthetic game.getActionSize()
ACTION_PAD = 128                        # lane-dense padded output width
NEG_INF = -1e30


def _round_up(x, m):
    return ((x + m - 1) // m) * m


def _mlp_logsoftmax_kernel(x_ref, w1_ref, b1_ref, w2_ref, b2_ref,
                           w3_ref, b3_ref, logp_ref):
    """fc1 -> relu -> fc2 -> relu -> fc3 -> log_softmax for one batch tile."""
    x = x_ref[...]                                                  # (TB, 256) bf16

    h1 = jnp.dot(x, w1_ref[...], preferred_element_type=jnp.float32)
    h1 = jnp.maximum(h1 + b1_ref[...], 0.0)                         # (TB, 128) f32

    h2 = jnp.dot(h1.astype(jnp.bfloat16), w2_ref[...],
                 preferred_element_type=jnp.float32)
    h2 = jnp.maximum(h2 + b2_ref[...], 0.0)                         # (TB, 256) f32

    pi = jnp.dot(h2.astype(jnp.bfloat16), w3_ref[...],
                 preferred_element_type=jnp.float32)
    pi = pi + b3_ref[...]                                           # (TB, 128) f32
    # Padded action columns carry bias -1e30 -> exp() contributes 0 below.

    m = jnp.max(pi, axis=-1, keepdims=True)
    z = pi - m
    lse = jnp.log(jnp.sum(jnp.exp(z), axis=-1, keepdims=True))
    logp_ref[...] = z - lse


def nnet_forward(s, kernel_params, *, batch_tile=512):
    """s: (B, 3, 9, 9) float32 (NCHW).  Returns (log_pi (B, 82), v (1,))."""
    w1, b1, w2, b2, w3, b3 = kernel_params    # already padded / bf16 weights
    B = s.shape[0]
    x2d = s.reshape(B, IN_DIM).astype(jnp.float32)

    # Batch tile: multiple of 8 (sublane rule), capped at batch_tile.
    tb = min(batch_tile, _round_up(B, 8))
    Bp = _round_up(B, tb)

    # Pad feature dim 243 -> 256 (zeros) and batch -> Bp (zero rows), cast bf16.
    x_pad = jnp.pad(x2d, ((0, Bp - B), (0, IN_PAD - IN_DIM))).astype(jnp.bfloat16)

    grid = (Bp // tb,)
    resident2d = lambda shape: pl.BlockSpec(shape, lambda i: (0, 0))

    log_pi_pad = pl.pallas_call(
        _mlp_logsoftmax_kernel,
        out_shape=jax.ShapeDtypeStruct((Bp, ACTION_PAD), jnp.float32),
        grid_spec=pltpu.PrefetchScalarGridSpec(
            num_scalar_prefetch=0,
            grid=grid,
            in_specs=[
                pl.BlockSpec((tb, IN_PAD), lambda i: (i, 0)),        # x tile
                resident2d((IN_PAD, H1_PAD)),                        # w1
                resident2d((1, H1_PAD)),                             # b1
                resident2d((H1_PAD, H2)),                            # w2
                resident2d((1, H2)),                                 # b2
                resident2d((H2, ACTION_PAD)),                        # w3
                resident2d((1, ACTION_PAD)),                         # b3
            ],
            out_specs=pl.BlockSpec((tb, ACTION_PAD), lambda i: (i, 0)),
        ),
        compiler_params=pltpu.CompilerParams(
            dimension_semantics=("parallel",),
        ),
    )(x_pad, w1, b1, w2, b2, w3, b3)

    log_pi = log_pi_pad[:B, :ACTION_SIZE]

    # v = tanh(torch.tensor([0])) is the constant [0.0] — trivial glue in JAX.
    v = jnp.tanh(jnp.zeros((1,), dtype=jnp.float32))
    return log_pi, v


def init_params(key):
    """Xavier-normal weights (as in the PyTorch __init__), zero biases.

    Returns raw (unpadded, f32) parameters.  Use pad_params() to get the
    padded bf16 parameters consumed by the Pallas kernel.
    """
    k1, k2, k3 = jax.random.split(key, 3)

    def xavier(k, fan_in, fan_out):
        std = (2.0 / (fan_in + fan_out)) ** 0.5
        return jax.random.normal(k, (fan_in, fan_out), jnp.float32) * std

    w1 = xavier(k1, IN_DIM, H1)
    b1 = jnp.zeros((1, H1), jnp.float32)
    w2 = xavier(k2, H1, H2)
    b2 = jnp.zeros((1, H2), jnp.float32)
    w3 = xavier(k3, H2, ACTION_SIZE)
    b3 = jnp.zeros((1, ACTION_SIZE), jnp.float32)
    # conv1 / conv2 from __init__ are unused in forward, so not materialized.
    return (w1, b1, w2, b2, w3, b3)


def pad_params(raw_params):
    """Pad to MXU-friendly shapes and cast weights to bf16 (done once)."""
    w1, b1, w2, b2, w3, b3 = raw_params
    w1p = jnp.pad(w1, ((0, IN_PAD - IN_DIM), (0, H1_PAD - H1))).astype(jnp.bfloat16)
    b1p = jnp.pad(b1, ((0, 0), (0, H1_PAD - H1)))                       # f32
    w2p = jnp.pad(w2, ((0, H1_PAD - H1), (0, 0))).astype(jnp.bfloat16)
    b2p = b2                                                            # f32
    w3p = jnp.pad(w3, ((0, 0), (0, ACTION_PAD - ACTION_SIZE))).astype(jnp.bfloat16)
    # Padded action columns get a huge negative bias so log_softmax ignores them.
    b3p = jnp.pad(b3, ((0, 0), (0, ACTION_PAD - ACTION_SIZE)),
                  constant_values=NEG_INF)                              # f32
    return (w1p, b1p, w2p, b2p, w3p, b3p)


def _reference_forward(s, raw_params):
    """Pure-JAX reference mirroring the kernel's bf16/f32 dataflow."""
    w1, b1, w2, b2, w3, b3 = raw_params
    B = s.shape[0]
    x = s.reshape(B, IN_DIM).astype(jnp.bfloat16)
    h1 = jnp.maximum(
        jnp.dot(x, w1.astype(jnp.bfloat16), preferred_element_type=jnp.float32) + b1, 0.0)
    h2 = jnp.maximum(
        jnp.dot(h1.astype(jnp.bfloat16), w2.astype(jnp.bfloat16),
                preferred_element_type=jnp.float32) + b2, 0.0)
    pi = jnp.dot(h2.astype(jnp.bfloat16), w3.astype(jnp.bfloat16),
                 preferred_element_type=jnp.float32) + b3
    return jax.nn.log_softmax(pi, axis=-1)


if __name__ == "__main__":
    key = jax.random.PRNGKey(0)
    k_x, k_p = jax.random.split(key)

    batch = 2  # tiny smoke-test batch; batch tiling pays off at large B
    x = jax.random.normal(k_x, (batch, FEAT_CNT, BOARD_X, BOARD_Y), jnp.float32)
    raw_params = init_params(k_p)
    kernel_params = pad_params(raw_params)

    log_pi, v = nnet_forward(x, kernel_params)
    jax.block_until_ready((log_pi, v))

    assert log_pi.shape == (batch, ACTION_SIZE)
    assert v.shape == (1,)
    # log_softmax rows must exp-sum to 1.
    row_sums = jnp.sum(jnp.exp(log_pi), axis=-1)
    assert jnp.allclose(row_sums, 1.0, atol=1e-4), row_sums
    # Match the pure-JAX reference (same bf16/f32 dataflow).
    ref = _reference_forward(x, raw_params)
    assert jnp.allclose(log_pi, ref, atol=2e-2, rtol=2e-2), (
        float(jnp.max(jnp.abs(log_pi - ref))))

    print("KERNEL_OK")
</pallas_src>

<mosaic_0001>
module attributes {stable_mosaic.version = 11 : i64} {
  func.func @_mlp_logsoftmax_kernel(%arg0: i32, %arg1: memref<8x256xbf16, #tpu.memory_space<vmem>>, %arg2: memref<256x128xbf16, #tpu.memory_space<vmem>>, %arg3: memref<1x128xf32, #tpu.memory_space<vmem>>, %arg4: memref<128x256xbf16, #tpu.memory_space<vmem>>, %arg5: memref<1x256xf32, #tpu.memory_space<vmem>>, %arg6: memref<256x128xbf16, #tpu.memory_space<vmem>>, %arg7: memref<1x128xf32, #tpu.memory_space<vmem>>, %arg8: memref<8x128xf32, #tpu.memory_space<vmem>>) attributes {dimension_semantics = [#tpu.dimension_semantics<parallel>], iteration_bounds = array<i64: 1>, scalar_prefetch = 0 : i64, scratch_operands = 0 : i64, tpu.core_type = #tpu.core_type<tc>, window_params = [{transform_indices = @transform_0, window_bounds = array<i64: 8, 256>}, {pipeline_mode = #tpu.pipeline_mode<synchronous>, transform_indices = @transform_1, window_bounds = array<i64: 256, 128>}, {pipeline_mode = #tpu.pipeline_mode<synchronous>, transform_indices = @transform_2, window_bounds = array<i64: 1, 128>}, {pipeline_mode = #tpu.pipeline_mode<synchronous>, transform_indices = @transform_3, window_bounds = array<i64: 128, 256>}, {pipeline_mode = #tpu.pipeline_mode<synchronous>, transform_indices = @transform_4, window_bounds = array<i64: 1, 256>}, {pipeline_mode = #tpu.pipeline_mode<synchronous>, transform_indices = @transform_5, window_bounds = array<i64: 256, 128>}, {pipeline_mode = #tpu.pipeline_mode<synchronous>, transform_indices = @transform_6, window_bounds = array<i64: 1, 128>}, {transform_indices = @transform_7, window_bounds = array<i64: 8, 128>}]} {
    %c0 = arith.constant 0 : index
    %c0_0 = arith.constant 0 : index
    %0 = vector.load %arg1[%c0, %c0_0] : memref<8x256xbf16, #tpu.memory_space<vmem>>, vector<8x256xbf16>
    %c0_1 = arith.constant 0 : index
    %c0_2 = arith.constant 0 : index
    %1 = vector.load %arg2[%c0_1, %c0_2] : memref<256x128xbf16, #tpu.memory_space<vmem>>, vector<256x128xbf16>
    %cst = arith.constant dense<0.000000e+00> : vector<8x128xf32>
    %2 = tpu.matmul %0, %1, %cst {dimension_numbers = #tpu.dot_dimension_numbers<[1], [0], [0], [1], [0, 0, 1, 1], [], []>} : vector<8x256xbf16>, vector<256x128xbf16>, vector<8x128xf32> -> vector<8x128xf32>
    %c0_3 = arith.constant 0 : index
    %c0_4 = arith.constant 0 : index
    %3 = vector.load %arg3[%c0_3, %c0_4] : memref<1x128xf32, #tpu.memory_space<vmem>>, vector<1x128xf32>
    %4 = vector.broadcast %3 : vector<1x128xf32> to vector<8x128xf32>
    %5 = arith.addf %2, %4 : vector<8x128xf32>
    %cst_5 = arith.constant 0.000000e+00 : f32
    %6 = vector.broadcast %cst_5 : f32 to vector<8x128xf32>
    %7 = arith.maximumf %5, %6 : vector<8x128xf32>
    %8 = arith.truncf %7 : vector<8x128xf32> to vector<8x128xbf16>
    %c0_6 = arith.constant 0 : index
    %c0_7 = arith.constant 0 : index
    %9 = vector.load %arg4[%c0_6, %c0_7] : memref<128x256xbf16, #tpu.memory_space<vmem>>, vector<128x256xbf16>
    %cst_8 = arith.constant dense<0.000000e+00> : vector<8x256xf32>
    %10 = tpu.matmul %8, %9, %cst_8 {dimension_numbers = #tpu.dot_dimension_numbers<[1], [0], [0], [1], [0, 0, 1, 1], [], []>} : vector<8x128xbf16>, vector<128x256xbf16>, vector<8x256xf32> -> vector<8x256xf32>
    %c0_9 = arith.constant 0 : index
    %c0_10 = arith.constant 0 : index
    %11 = vector.load %arg5[%c0_9, %c0_10] : memref<1x256xf32, #tpu.memory_space<vmem>>, vector<1x256xf32>
    %12 = vector.broadcast %11 : vector<1x256xf32> to vector<8x256xf32>
    %13 = arith.addf %10, %12 : vector<8x256xf32>
    %cst_11 = arith.constant 0.000000e+00 : f32
    %14 = vector.broadcast %cst_11 : f32 to vector<8x256xf32>
    %15 = arith.maximumf %13, %14 : vector<8x256xf32>
    %16 = arith.truncf %15 : vector<8x256xf32> to vector<8x256xbf16>
    %c0_12 = arith.constant 0 : index
    %c0_13 = arith.constant 0 : index
    %17 = vector.load %arg6[%c0_12, %c0_13] : memref<256x128xbf16, #tpu.memory_space<vmem>>, vector<256x128xbf16>
    %cst_14 = arith.constant dense<0.000000e+00> : vector<8x128xf32>
    %18 = tpu.matmul %16, %17, %cst_14 {dimension_numbers = #tpu.dot_dimension_numbers<[1], [0], [0], [1], [0, 0, 1, 1], [], []>} : vector<8x256xbf16>, vector<256x128xbf16>, vector<8x128xf32> -> vector<8x128xf32>
    %c0_15 = arith.constant 0 : index
    %c0_16 = arith.constant 0 : index
    %19 = vector.load %arg7[%c0_15, %c0_16] : memref<1x128xf32, #tpu.memory_space<vmem>>, vector<1x128xf32>
    %20 = vector.broadcast %19 : vector<1x128xf32> to vector<8x128xf32>
    %21 = arith.addf %18, %20 : vector<8x128xf32>
    %cst_17 = arith.constant dense<0xFF800000> : vector<8xf32>
    %22 = vector.multi_reduction <maximumf>, %21, %cst_17 [1] : vector<8x128xf32> to vector<8xf32>
    %23 = vector.shape_cast %22 : vector<8xf32> to vector<8x1xf32>
    %24 = vector.broadcast %23 : vector<8x1xf32> to vector<8x128xf32>
    %25 = arith.subf %21, %24 : vector<8x128xf32>
    %26 = math.exp %25 : vector<8x128xf32>
    %cst_18 = arith.constant dense<0.000000e+00> : vector<8xf32>
    %27 = vector.multi_reduction <add>, %26, %cst_18 [1] : vector<8x128xf32> to vector<8xf32>
    %28 = vector.shape_cast %27 : vector<8xf32> to vector<8x1xf32>
    %29 = math.log %28 : vector<8x1xf32>
    %30 = vector.broadcast %29 : vector<8x1xf32> to vector<8x128xf32>
    %31 = arith.subf %25, %30 : vector<8x128xf32>
    %c0_19 = arith.constant 0 : index
    %c0_20 = arith.constant 0 : index
    %32 = vector.load %arg8[%c0_19, %c0_20] : memref<8x128xf32, #tpu.memory_space<vmem>>, vector<8x128xf32>
    tpu.vector_store %arg8[%c0_19, %c0_20], %31 {strides = array<i32>} : memref<8x128xf32, #tpu.memory_space<vmem>>, vector<8x128xf32>,
    return
  }
  func.func @transform_0(%arg0: i32) -> (i32, i32) {
    %c0_i32 = arith.constant 0 : i32
    %c0_i32_0 = arith.constant 0 : i32
    return %arg0, %c0_i32 : i32, i32
  }
  func.func @transform_1(%arg0: i32) -> (i32, i32) {
    %c0_i32 = arith.constant 0 : i32
    %c0_i32_0 = arith.constant 0 : i32
    %c0_i32_1 = arith.constant 0 : i32
    return %c0_i32, %c0_i32_0 : i32, i32
  }
  func.func @transform_2(%arg0: i32) -> (i32, i32) {
    %c0_i32 = arith.constant 0 : i32
    %c0_i32_0 = arith.constant 0 : i32
    %c0_i32_1 = arith.constant 0 : i32
    return %c0_i32, %c0_i32_0 : i32, i32
  }
  func.func @transform_3(%arg0: i32) -> (i32, i32) {
    %c0_i32 = arith.constant 0 : i32
    %c0_i32_0 = arith.constant 0 : i32
    %c0_i32_1 = arith.constant 0 : i32
    return %c0_i32, %c0_i32_0 : i32, i32
  }
  func.func @transform_4(%arg0: i32) -> (i32, i32) {
    %c0_i32 = arith.constant 0 : i32
    %c0_i32_0 = arith.constant 0 : i32
    %c0_i32_1 = arith.constant 0 : i32
    return %c0_i32, %c0_i32_0 : i32, i32
  }
  func.func @transform_5(%arg0: i32) -> (i32, i32) {
    %c0_i32 = arith.constant 0 : i32
    %c0_i32_0 = arith.constant 0 : i32
    %c0_i32_1 = arith.constant 0 : i32
    return %c0_i32, %c0_i32_0 : i32, i32
  }
  func.func @transform_6(%arg0: i32) -> (i32, i32) {
    %c0_i32 = arith.constant 0 : i32
    %c0_i32_0 = arith.constant 0 : i32
    %c0_i32_1 = arith.constant 0 : i32
    return %c0_i32, %c0_i32_0 : i32, i32
  }
  func.func @transform_7(%arg0: i32) -> (i32, i32) {
    %c0_i32 = arith.constant 0 : i32
    %c0_i32_0 = arith.constant 0 : i32
    return %arg0, %c0_i32 : i32, i32
  }
}

</mosaic_0001>

<bundles_post_ra>
// kernel: tpu_custom_call.1
= control target key start
LH: loop header
LB: loop body
LE: loop exit
PB: predicated region body
PF: predicated region fallthrough
CT: control target
= control target key end

     0   :  { %12 = vsyncpa [#allocation3], 0  ;;  %s978_s0 = inlined_call_operand.hbm [shape: bf16[8,256], index: 0, kind: input, shape index: {}]   ;;  %s979_s1 = inlined_call_operand.hbm [shape: bf16[256,128], index: 1, kind: input, shape index: {}]   ;;  %s980_s2 = inlined_call_operand.vmem [shape: f32[1,128], index: 2, kind: input, shape index: {}]   ;;  %s981_s3 = inlined_call_operand.hbm [shape: bf16[128,256], index: 3, kind: input, shape index: {}]   ;;  %s982_s4 = inlined_call_operand.vmem [shape: f32[1,256], index: 4, kind: input, shape index: {}]   ;;  %s983_s5 = inlined_call_operand.hbm [shape: bf16[256,128], index: 5, kind: input, shape index: {}]   ;;  %s984_s6 = inlined_call_operand.vmem [shape: f32[1,128], index: 6, kind: input, shape index: {}]   ;;  %s985_s7 = inlined_call_operand.hbm [shape: f32[8,128], index: 7, kind: output, shape index: {}]  }
   0x1   :  { %13 = vsyncpa [#allocation6], 0 }
   0x2   :  { %14 = vsyncpa [#allocation9], 0 }
   0x3   :  { %15 = vsyncpa [#allocation4], 0  ;;  %s898_s24 = smov [#allocation5]  }
   0x4   :  { %s31_s25 = sshll.u32 %s898_s24, 4  ;;  %s32_s25 = int_to_ptr.vmem [resolvable:$true] %s31_s25 }
   0x5   :  { %s798_s26 = scalar_lea.vmem %s32_s25, 2048  ;;  %p803_p1 = scmp.lt.s32.totalorder %s32_s25, %s32_s25 }
   0x6   :  { %p799_p0 = scmp.ne.s32.totalorder %s32_s25, %s798_s26  ;;  %p804_p2 = scmp.lt.s32.totalorder %s798_s26, %s798_s26 }
   0x8   :  { %p805_p3 = por %p804_p2, %p803_p1 }
   0xa   :  { %p806_p4 = pnand %p805_p3, %p799_p0 }
   0xc   :  { %809 = shalt.err (!%p806_p4)
}
   0xd   :  { %s899_s27 = smov 64   ;;  %s900_s28 = smov 4  }
   0xe   :  { %37 = dma.hbm_to_vmem [thread:$0]  %s979_s1, 2048, %s32_s25, [#allocation6], %s899_s27, %s899_s27, %s900_s28  }
   0xf   :  { %s901_s8 = smov [#allocation2]   ;;  %s902_s10 = smov [#allocation7]  }
  0x10   :  { %s22_s9 = sshll.u32 %s901_s8, 4  ;;  %s45_s11 = sshll.u32 %s902_s10, 4  ;;  %s23_s9 = int_to_ptr.vmem [resolvable:$true] %s22_s9  ;;  %s46_s11 = int_to_ptr.vmem [resolvable:$true] %s45_s11 }
  0x11   :  { %s818_s12 = scalar_lea.vmem %s23_s9, 128  ;;  %p823_p6 = scmp.lt.s32.totalorder %s23_s9, %s23_s9 }
  0x12   :  { %p819_p5 = scmp.ne.s32.totalorder %s23_s9, %s818_s12  ;;  %p824_p7 = scmp.lt.s32.totalorder %s818_s12, %s818_s12 }
  0x14   :  { %p825_p8 = por %p824_p7, %p823_p6 }
  0x16   :  { %p826_p9 = pnand %p825_p8, %p819_p5 }
  0x18   :  { %829 = shalt.err (!%p826_p9)
}
  0x19   :  { %25 = dma.hbm_to_vmem [thread:$0]  %s978_s0, 128, %s23_s9, [#allocation3]  }
  0x1a   :  { %s838_s15 = scalar_lea.vmem %s46_s11, 2048  ;;  %p843_p11 = scmp.lt.s32.totalorder %s46_s11, %s46_s11 }
  0x1b   :  { %p839_p10 = scmp.ne.s32.totalorder %s46_s11, %s838_s15  ;;  %p844_p12 = scmp.lt.s32.totalorder %s838_s15, %s838_s15 }
  0x1d   :  { %p845_p13 = por %p844_p12, %p843_p11 }
  0x1f   :  { %p846_p0 = pnand %p845_p13, %p839_p10 }
  0x21   :  { %849 = shalt.err (!%p846_p0)
}
  0x22   :  { %s903_s1 = smov 128   ;;  %s904_s16 = smov 8  }
  0x23   :  { %51 = dma.hbm_to_vmem [thread:$0]  %s981_s3, 2048, %s46_s11, [#allocation6], %s903_s1, %s903_s1, %s904_s16  }
  0x24   :  { %s905_s19 = smov [#allocation8]  }
  0x25   :  { %s59_s20 = sshll.u32 %s905_s19, 4  ;;  %s60_s20 = int_to_ptr.vmem [resolvable:$true] %s59_s20 }
  0x26   :  { %s858_s21 = scalar_lea.vmem %s60_s20, 2048  ;;  %p863_p2 = scmp.lt.s32.totalorder %s60_s20, %s60_s20 }
  0x27   :  { %p859_p1 = scmp.ne.s32.totalorder %s60_s20, %s858_s21  ;;  %p864_p3 = scmp.lt.s32.totalorder %s858_s21, %s858_s21 }
  0x29   :  { %p865_p4 = por %p864_p3, %p863_p2 }
  0x2b   :  { %p866_p5 = pnand %p865_p4, %p859_p1 }
  0x2d   :  { %869 = shalt.err (!%p866_p5)
}
  0x2e   :  { %65 = dma.hbm_to_vmem [thread:$0]  %s983_s5, 2048, %s60_s20, [#allocation9], %s899_s27, %s899_s27, %s900_s28  }
  0x2f   :  { %890 = dma.done.wait [#allocation3], 128  }
  0x30   :  { %891 = vsyncadd [#allocation3], 4294967168 }
  0x31   :  { %892 = dma.done.wait [#allocation6], 4096  }
  0x32   :  { %893 = vsyncadd [#allocation6], 4294963200 }
  0x33   :  { %894 = dma.done.wait [#allocation9], 2048  }
  0x34   :  { %895 = vsyncadd [#allocation9], 4294965248  ;;  %v728_v0 = vld [vmem:[#allocation5 + $0x78] sm:$0xff]   ;;  %v730_v2 = vld [vmem:[#allocation5 + $0x70] sm:$0xff]   ;;  %v906_v35 = vmov 0   ;;  %v284_v61 = vlaneseq }
  0x35   :  { %v729_v1 = vld [vmem:[#allocation5 + $0x38] sm:$0xff]   ;;  %674 = vmatprep.subr.bf16.mxu0 %v728_v0  ;;  %v731_v3 = vld [vmem:[#allocation5 + $0x30] sm:$0xff]   ;;  %v732_v4 = vld [vmem:[#allocation5 + $0x68] sm:$0xff]   ;;  %406 = vmatprep.mubr.bf16.mxu1 %v906_v35 }
  0x36   :  { %675 = vmatpush3.bf16.msra.mxu0 %v729_v1  ;;  %v733_v5 = vld [vmem:[#allocation5 + $0x28] sm:$0xff]   ;;  %v734_v6 = vld [vmem:[#allocation5 + $0x60] sm:$0xff]   ;;  %v736_v8 = vld [vmem:[#allocation5 + $0x58] sm:$0xff]   ;;  %v285_v62 = vshrl.u32 %v284_v61, 7 }
  0x37   :  { %676 = vmatprep.subr.bf16.mxu0 %v730_v2  ;;  %v735_v7 = vld [vmem:[#allocation5 + $0x20] sm:$0xff]   ;;  %v737_v9 = vld [vmem:[#allocation5 + $0x18] sm:$0xff]   ;;  %v738_v10 = vld [vmem:[#allocation5 + $0x50] sm:$0xff]  }
  0x38   :  { %v81_v11 = vld [vmem:[#allocation2] sm:$0xff]  ;;  %v749_v15 = vld [vmem:[#allocation7 + $0x64] ss:$8 sps:$4 sm:$0xff]   ;;  %v739_v16 = vld [vmem:[#allocation5 + $0x10] sm:$0xff]   ;;  %v286_v63 = vsub.s32 0, %v285_v62  ;;  %v290_v1 = vsub.s32 1, %v285_v62 }
  0x39   :  { %v624_v12 = vcombine.high %v81_v11, %v81_v11  ;;  %v746_v13 = vld [vmem:[#allocation7 + $0x74] ss:$8 sps:$4 sm:$0xff]   ;;  %v748_v14 = vld [vmem:[#allocation7 + $0x70] ss:$8 sps:$4 sm:$0xff]   ;;  %v740_v17 = vld [vmem:[#allocation5 + $0x48] sm:$0xff]   ;;  %v623_v27 = vcombine.low %v81_v11, %v81_v11 }
  0x3a   :  { %677 = vmatpush3.bf16.msra.mxu0 %v731_v3  ;;  %374 = vmatprep.subr.bf16.mxu1 %v746_v13  ;;  %v741_v18 = vld [vmem:[#allocation5 + $0x8] sm:$0xff]   ;;  %v742_v20 = vld [vmem:[#allocation5 + $0x40] sm:$0xff]   ;;  %v752_v21 = vld [vmem:[#allocation7 + $0x54] ss:$8 sps:$4 sm:$0xff]  }
  0x3b   :  { %678 = vmatprep.subr.bf16.mxu0 %v732_v4  ;;  %256 = vmatprep.mubr.bf16.mxu0 %v624_v12  ;;  %v751_v19 = vld [vmem:[#allocation7 + $0x60] ss:$8 sps:$4 sm:$0xff]   ;;  %v754_v22 = vld [vmem:[#allocation7 + $0x50] ss:$8 sps:$4 sm:$0xff]   ;;  %v755_v23 = vld [vmem:[#allocation7 + $0x44] ss:$8 sps:$4 sm:$0xff]  }
  0x3c   :  { %375 = vmatpush1.bf16.msra.mxu1 %v748_v14  ;;  %v743_v24 = vld [vmem:[#allocation5] sm:$0xff]   ;;  %v758_v26 = vld [vmem:[#allocation7 + $0x34] ss:$8 sps:$4 sm:$0xff]   ;;  %v760_v28 = vld [vmem:[#allocation7 + $0x30] ss:$8 sps:$4 sm:$0xff]  }
  0x3d   :  { %376 = vmatprep.subr.bf16.mxu1 %v749_v15  ;;  %v757_v25 = vld [vmem:[#allocation7 + $0x40] ss:$8 sps:$4 sm:$0xff]   ;;  %v761_v29 = vld [vmem:[#allocation7 + $0x24] ss:$8 sps:$4 sm:$0xff]   ;;  %v764_v31 = vld [vmem:[#allocation7 + $0x14] ss:$8 sps:$4 sm:$0xff]  }
  0x3e   :  { %679 = vmatpush3.bf16.msra.mxu0 %v733_v5  ;;  %v763_v30 = vld [vmem:[#allocation7 + $0x20] ss:$8 sps:$4 sm:$0xff]   ;;  %v766_v32 = vld [vmem:[#allocation7 + $0x10] ss:$8 sps:$4 sm:$0xff]   ;;  %v767_v33 = vld [vmem:[#allocation7 + $0x4] ss:$8 sps:$4 sm:$0xff]  }
  0x3f   :  { %680 = vmatprep.subr.bf16.mxu0 %v734_v6  ;;  %v769_v34 = vld [vmem:[#allocation7] ss:$8 sps:$4 sm:$0xff]   ;;  %v770_v36 = vld [vmem:[#allocation8 + $0x78] sm:$0xff]   ;;  %v772_v38 = vld [vmem:[#allocation8 + $0x70] sm:$0xff]  }
  0x40   :  { %377 = vmatpush1.bf16.msra.mxu1 %v751_v19  ;;  %v771_v37 = vld [vmem:[#allocation8 + $0x38] sm:$0xff]   ;;  %v773_v39 = vld [vmem:[#allocation8 + $0x30] sm:$0xff]   ;;  %v774_v40 = vld [vmem:[#allocation8 + $0x68] sm:$0xff]  }
  0x41   :  { %378 = vmatprep.subr.bf16.mxu1 %v752_v21  ;;  %v775_v41 = vld [vmem:[#allocation8 + $0x28] sm:$0xff]   ;;  %v776_v42 = vld [vmem:[#allocation8 + $0x60] sm:$0xff]   ;;  %v778_v44 = vld [vmem:[#allocation8 + $0x58] sm:$0xff]  }
  0x42   :  { %681 = vmatpush3.bf16.msra.mxu0 %v735_v7  ;;  %v777_v43 = vld [vmem:[#allocation8 + $0x20] sm:$0xff]   ;;  %v779_v45 = vld [vmem:[#allocation8 + $0x18] sm:$0xff]   ;;  %v780_v46 = vld [vmem:[#allocation8 + $0x50] sm:$0xff]  }
  0x43   :  { %682 = vmatprep.subr.bf16.mxu0 %v736_v8  ;;  %v781_v47 = vld [vmem:[#allocation8 + $0x10] sm:$0xff]   ;;  %v622_v49 = vld [vmem:[%s980_s2] ss:$0 sm:$0xff]  ;;  %v782_v57 = vld [vmem:[#allocation8 + $0x48] sm:$0xff]  }
  0x44   :  { %379 = vmatpush1.bf16.msra.mxu1 %v754_v22  ;;  %v783_v58 = vld [vmem:[#allocation8 + $0x8] sm:$0xff]   ;;  %v784_v59 = vld [vmem:[#allocation8 + $0x40] sm:$0xff]   ;;  %v282_v0 = vld [vmem:[%s982_s4] sm:$0x3]  ;;  %s907_s4 = smov [#allocation10]  }
  0x45   :  { %380 = vmatprep.subr.bf16.mxu1 %v755_v23  ;;  %v785_v60 = vld [vmem:[#allocation8] sm:$0xff]   ;;  %v287_v2 = vrot.slane %v282_v0, %v286_v63  ;;  %v291_v3 = vrot.slane %v282_v0, %v290_v1  ;;  %s611_s26 = sshll.u32 %s907_s4, 4  ;;  %s612_s26 = int_to_ptr.vmem [resolvable:$true] %s611_s26 }
  0x46   :  { %683 = vmatpush3.bf16.msra.mxu0 %v737_v9  ;;  %p875_p7 = scmp.lt.s32.totalorder %s612_s26, %s612_s26 }
  0x47   :  { %684 = vmatprep.subr.bf16.mxu0 %v738_v10 }
  0x48   :  { %381 = vmatpush1.bf16.msra.mxu1 %v757_v25 }
  0x49   :  { %382 = vmatprep.subr.bf16.mxu1 %v758_v26 }
  0x4a   :  { %685 = vmatpush3.bf16.msra.mxu0 %v739_v16  ;;  %v657_v16 = vld [vmem:[%s984_s6] ss:$0 sm:$0xff]  ;;  %s870_s6 = scalar_lea.vmem %s612_s26, 128 }
  0x4b   :  { %686 = vmatprep.subr.bf16.mxu0 %v740_v17  ;;  %p871_p6 = scmp.ne.s32.totalorder %s612_s26, %s870_s6  ;;  %p876_p8 = scmp.lt.s32.totalorder %s870_s6, %s870_s6 }
  0x4c   :  { %383 = vmatpush1.bf16.msra.mxu1 %v760_v28 }
  0x4d   :  { %384 = vmatprep.subr.bf16.mxu1 %v761_v29  ;;  %p877_p9 = por %p876_p8, %p875_p7 }
  0x4e   :  { %687 = vmatpush3.bf16.msra.mxu0 %v741_v18 }
  0x4f   :  { %688 = vmatprep.subr.bf16.mxu0 %v742_v20  ;;  %p878_p10 = pnand %p877_p9, %p871_p6 }
  0x50   :  { %385 = vmatpush1.bf16.msra.mxu1 %v763_v30 }
  0x51   :  { %386 = vmatprep.subr.bf16.mxu1 %v764_v31 }
  0x52   :  { %689 = vmatpush3.bf16.msra.mxu0 %v743_v24 }
  0x53   :  { %696 = vmatprep.subr.bf16.mxu0 %v770_v36 }
  0x54   :  { %387 = vmatpush1.bf16.msra.mxu1 %v766_v32 }
  0x55   :  { %257 = vmatmul.mubr.bf16.vlgmr.msra.gmra.mxu0 %v623_v27  ;;  %388 = vmatprep.subr.bf16.mxu1 %v767_v33 }
  0x56   :  { %697 = vmatpush3.bf16.msra.mxu0 %v771_v37 }
  0x57   :  { %698 = vmatprep.subr.bf16.mxu0 %v772_v38 }
  0x58   :  { %389 = vmatpush1.bf16.msra.mxu1 %v769_v34 }
  0x5a   :  { %699 = vmatpush3.bf16.msra.mxu0 %v773_v39 }
  0x5b   :  { %700 = vmatprep.subr.bf16.mxu0 %v774_v40 }
  0x5e   :  { %701 = vmatpush3.bf16.msra.mxu0 %v775_v41 }
  0x5f   :  { %702 = vmatprep.subr.bf16.mxu0 %v776_v42 }
  0x62   :  { %703 = vmatpush3.bf16.msra.mxu0 %v777_v43 }
  0x63   :  { %704 = vmatprep.subr.bf16.mxu0 %v778_v44 }
  0x66   :  { %705 = vmatpush3.bf16.msra.mxu0 %v779_v45 }
  0x67   :  { %706 = vmatprep.subr.bf16.mxu0 %v780_v46 }
  0x6a   :  { %707 = vmatpush3.bf16.msra.mxu0 %v781_v47 }
  0x6b   :  { %708 = vmatprep.subr.bf16.mxu0 %v782_v57 }
  0x6e   :  { %709 = vmatpush3.bf16.msra.mxu0 %v783_v58 }
  0x6f   :  { %710 = vmatprep.subr.bf16.mxu0 %v784_v59 }
  0x72   :  { %711 = vmatpush3.bf16.msra.mxu0 %v785_v60 }
 0x115   :  { %v690_v48 = vpop.f32.mrf.mxu0 }
 0x117   :  { %v691_v50 = vpop.f32.mrf.mxu0 }
 0x118   :  { %v692_v51 = vadd.f32 %v691_v50, %v690_v48 }
 0x119   :  { %v693_v52 = vpop.f32.mrf.mxu0 }
 0x11a   :  { %v259_v53 = vadd.f32 %v692_v51, %v622_v49 }
 0x11b   :  { %v694_v54 = vpop.f32.mrf.mxu0 }
 0x11c   :  { %v264_v55 = vmax.f32 %v259_v53, 0.0 }
 0x11e   :  { %v265_v56 = vpack.c.bf16 %v264_v55, %v264_v55 }
 0x120   :  { %407 = vmatmul.mubr.bf16.vlgmr.msra.gmra.mxu1 %v265_v56 }
 0x1e0   :  { %v408_v4 = vpop.f32.mrf.mxu1 }
 0x1e1   :  { %v409_v5 = vadd.f32 %v408_v4, %v287_v2 }
 0x1e2   :  { %v410_v6 = vpop.f32.mrf.mxu1 }
 0x1e3   :  { %v411_v7 = vadd.f32 %v410_v6, %v291_v3  ;;  %v415_v8 = vmax.f32 %v409_v5, 0.0 }
 0x1e4   :  { %v412_v9 = vpop.f32.mrf.mxu1 }
 0x1e5   :  { %v416_v10 = vmax.f32 %v411_v7, 0.0  ;;  %v417_v13 = vpack.c.bf16 %v415_v8, %v415_v8 }
 0x1e6   :  { %v413_v11 = vpop.f32.mrf.mxu1 }
 0x1e7   :  { %v418_v12 = vpack.c.bf16 %v416_v10, %v416_v10 }
 0x1e9   :  { %586 = vmatprep.mubr.bf16.mxu0 %v418_v12 }
 0x1ea   :  { %587 = vmatmul.mubr.bf16.vlgmr.msra.gmra.mxu0 %v417_v13 }
 0x2aa   :  { %v712_v14 = vpop.f32.mrf.mxu0 }
 0x2ac   :  { %v713_v15 = vpop.f32.mrf.mxu0 }
 0x2ad   :  { %v714_v17 = vadd.f32 %v713_v15, %v712_v14 }
 0x2ae   :  { %v715_v18 = vpop.f32.mrf.mxu0 }
 0x2af   :  { %v589_v19 = vadd.f32 %v714_v17, %v657_v16 }
 0x2b0   :  { %v716_v20 = vpop.f32.mrf.mxu0 }
 0x2b1   :  { %594 = vmax.xlane.f32.xlu0 %v589_v19 }
 0x33a   :  { %v595_v21 = vpop.xlane.xlu0 %594 }
 0x33b   :  { %v596_v22 = vsub.f32 %v589_v19, %v595_v21 }
 0x33d   :  { %v597_v23 = vmul.f32 1.442695, %v596_v22 }
 0x33f   :  { %786 = vpow2.f32 %v597_v23 }
 0x34c   :  { %v787_v24 = vpop.eup %786 }
 0x34d   :  { %599 = vadd.xlane.f32.xlu0 %v787_v24 }
 0x3d6   :  { %v600_v25 = vpop.xlane.xlu0 %599 }
 0x3d7   :  { %788 = vlog2.f32 %v600_v25 }
 0x3e4   :  { %v789_v26 = vpop.eup %788 }
 0x3e5   :  { %v602_v27 = vmul.f32 0.6931472, %v789_v26 }
 0x3e7   :  { %v603_v28 = vsub.f32 %v596_v22, %v602_v27 }
 0x3e9   :  { %604 = vst [vmem:[#allocation10] sm:$0xff] %v603_v28 }
 0x3ea   :  { %881 = shalt.err (!%p878_p10)
}
 0x3eb   :  { %614 = dma.vmem_to_hbm [thread:$0]  %s612_s26, 128, %s985_s7, [#allocation4]  }
 0x3ec   :  { %896 = dma.done.wait [#allocation4], 128  }
 0x3ed   :  { %897 = vsyncadd [#allocation4], 4294967168 }
 0x3ee   :  { %618 = vsyncpa [#allocation3], 1 }
 0x3ef   :  { %619 = vsyncpa [#allocation6], 1 }
 0x3f0   :  { %620 = vsyncpa [#allocation9], 1 }
 0x3f1   :  { %621 = vsyncpa [#allocation4], 1 }

</bundles_post_ra>
